<compile_context>
chip_gen: v7x
topology: tpu7x:2x2x1
jax: 0.10.0
libtpu: 0.0.40
codegen_flags: <defaults>
</compile_context>

<pallas_src>
import functools

import jax
import jax.numpy as jnp
import numpy as np
from jax.experimental import pallas as pl
from jax.experimental.pallas import tpu as pltpu


_VMEM_LIMIT_CACHE = None


def _vmem_limit():
    """Generation-aware scoped-VMEM cap: ~75% of physical VMEM, capped at 100 MiB.

    v5e/v6e (128 MiB physical) -> 96 MiB; v7x (64 MiB physical) -> 48 MiB.
    Falls back to a conservative 48 MiB if the query is unavailable.
    """
    global _VMEM_LIMIT_CACHE
    if _VMEM_LIMIT_CACHE is None:
        try:
            cap = int(pltpu.get_tpu_info().vmem_capacity_bytes)
            _VMEM_LIMIT_CACHE = int(min(cap * 3 // 4, 100 * 1024 * 1024))
        except Exception:
            _VMEM_LIMIT_CACHE = 48 * 1024 * 1024
    return _VMEM_LIMIT_CACHE


def _pick_tile(n, candidates=(512, 256, 128, 64, 32, 16, 8)):
    """Largest tile from `candidates` that divides n; falls back to n (full dim)."""
    for c in candidates:
        if n % c == 0:
            return c
    # TODO(synk): pad non-divisible large dims instead of full-dim fallback
    # (full-dim fallback can exceed the VMEM budget for large, prime-ish shapes).
    return n


# -----------------------------------------------------------------------------
# Fused Q/K/V projection + RoPE(+scale) epilogue kernel
# -----------------------------------------------------------------------------
def _qkv_rope_kernel(x_ref, wqkv_ref, bqkv_ref, cos_ref, sin_ref,
                     q_ref, k_ref, v_ref, *,
                     num_heads, num_kv_heads, head_dim, scale):
    D = head_dim
    half = D // 2
    nq = num_heads * D
    nk = num_kv_heads * D

    # One wide f32 matmul for q|k|v.
    acc = (jnp.dot(x_ref[...], wqkv_ref[...], preferred_element_type=jnp.float32)
           + bqkv_ref[...])
    cos = cos_ref[...]            # (tm, D) f32
    sin = sin_ref[...]

    def rope(xh):                 # elementwise math stays f32 (no bf16 VPU on v5e)
        xr = jnp.concatenate([-xh[:, half:], xh[:, :half]], axis=-1)
        return xh * cos + xr * sin

    # RoPE applied ONCE per token here (never re-done per attention q-tile);
    # the softmax scale is folded into Q so the attention kernel does no scaling.
    q_heads = [rope(acc[:, h * D:(h + 1) * D]) * scale for h in range(num_heads)]
    k_heads = [rope(acc[:, nq + j * D:nq + (j + 1) * D]) for j in range(num_kv_heads)]

    # Lane-dense, full-width stores; bf16 outputs halve HBM traffic and the
    # attention kernel's K/V VMEM residency while keeping f32 accumulation.
    q_ref[...] = jnp.concatenate(q_heads, axis=-1).astype(q_ref.dtype)
    k_ref[...] = jnp.concatenate(k_heads, axis=-1).astype(k_ref.dtype)
    v_ref[...] = acc[:, nq + nk:].astype(v_ref.dtype)


def fused_qkv_rope(x2, wqkv, bqkv2, cos2, sin2, *, num_heads, num_kv_heads,
                   head_dim, scale, out_dtype=jnp.bfloat16):
    """x2:(M,H) -> (q (M,nq) bf16, k (M,nk) bf16, v (M,nk) bf16), RoPE'd, q pre-scaled."""
    M, H = x2.shape
    N = wqkv.shape[1]
    D = head_dim
    nq, nk = num_heads * D, num_kv_heads * D
    tm = _pick_tile(M)
    kernel = functools.partial(_qkv_rope_kernel, num_heads=num_heads,
                               num_kv_heads=num_kv_heads, head_dim=head_dim,
                               scale=scale)
    # TODO(synk): for very large H / N the fused weight should get N- and K-tile
    # grid axes (with an f32 accumulator) instead of staying fully VMEM-resident.
    return pl.pallas_call(
        kernel,
        out_shape=(
            jax.ShapeDtypeStruct((M, nq), out_dtype),
            jax.ShapeDtypeStruct((M, nk), out_dtype),
            jax.ShapeDtypeStruct((M, nk), out_dtype),
        ),
        grid=(M // tm,),
        in_specs=[
            pl.BlockSpec((tm, H), lambda i: (i, 0)),
            pl.BlockSpec((H, N), lambda i: (0, 0)),     # weights resident across i
            pl.BlockSpec((1, N), lambda i: (0, 0)),
            pl.BlockSpec((tm, D), lambda i: (i, 0)),    # cos rows for this tile
            pl.BlockSpec((tm, D), lambda i: (i, 0)),    # sin rows for this tile
        ],
        out_specs=(
            pl.BlockSpec((tm, nq), lambda i: (i, 0)),
            pl.BlockSpec((tm, nk), lambda i: (i, 0)),
            pl.BlockSpec((tm, nk), lambda i: (i, 0)),
        ),
        compiler_params=pltpu.CompilerParams(
            dimension_semantics=("parallel",),
            vmem_limit_bytes=_vmem_limit(),
        ),
    )(x2, wqkv, bqkv2, cos2, sin2)


# -----------------------------------------------------------------------------
# Plain linear kernel (output projection), M-tiled
# -----------------------------------------------------------------------------
def _linear_kernel(x_ref, w_ref, b_ref, o_ref):
    o_ref[...] = (jnp.dot(x_ref[...], w_ref[...], preferred_element_type=jnp.float32)
                  + b_ref[...]).astype(o_ref.dtype)


def linear(x, w, b):
    M, K = x.shape
    N = w.shape[1]
    tm = _pick_tile(M)
    return pl.pallas_call(
        _linear_kernel,
        out_shape=jax.ShapeDtypeStruct((M, N), jnp.float32),
        grid=(M // tm,),
        in_specs=[
            pl.BlockSpec((tm, K), lambda i: (i, 0)),
            pl.BlockSpec((K, N), lambda i: (0, 0)),
            pl.BlockSpec((1, N), lambda i: (0, 0)),
        ],
        out_specs=pl.BlockSpec((tm, N), lambda i: (i, 0)),
        compiler_params=pltpu.CompilerParams(
            dimension_semantics=("parallel",),
            vmem_limit_bytes=_vmem_limit(),
        ),
    )(x, w, b.reshape(1, N))


# -----------------------------------------------------------------------------
# Flash-style attention kernel: online softmax over KV tiles, packed head layout
# -----------------------------------------------------------------------------
def _attn_kernel(q_ref, k_ref, v_ref, mask_ref, o_ref, acc_sc, m_sc, l_sc, *,
                 num_heads, num_kv_heads, head_dim):
    D = head_dim
    groups = num_heads // num_kv_heads
    ki = pl.program_id(2)

    @pl.when(ki == 0)
    def _():
        m_sc[...] = jnp.full_like(m_sc, -jnp.inf)
        l_sc[...] = jnp.zeros_like(l_sc)
        acc_sc[...] = jnp.zeros_like(acc_sc)

    q = q_ref[...]          # (tq, nh*D)  bf16, RoPE'd and pre-scaled
    k = k_ref[...]          # (tk, nkv*D) bf16, RoPE'd
    v = v_ref[...]          # (tk, nkv*D) bf16
    mask = mask_ref[...]    # (nh, tk)    f32 additive dynamic mask
    tq = q.shape[0]
    tk = k.shape[0]

    for j in range(num_kv_heads):
        # GQA group batching: stack the group's query heads along rows so each KV
        # head gets ONE tall QK^T and ONE PV matmul (amortizes the D-deep MXU pass).
        q_grp = jnp.concatenate(
            [q[:, (j * groups + g) * D:(j * groups + g + 1) * D]
             for g in range(groups)], axis=0)                          # (R, D) bf16
        mask_grp = jnp.concatenate(
            [jnp.broadcast_to(mask[j * groups + g:j * groups + g + 1, :], (tq, tk))
             for g in range(groups)], axis=0)                          # (R, tk) f32
        k_j = k[:, j * D:(j + 1) * D]                                  # (tk, D) bf16
        v_j = v[:, j * D:(j + 1) * D]                                  # (tk, D) bf16

        # bf16 MXU, f32 accumulate; no explicit K transpose (contract on last dims).
        s = jax.lax.dot_general(q_grp, k_j, (((1,), (1,)), ((), ())),
                                preferred_element_type=jnp.float32)    # (R, tk)
        s = s + mask_grp

        m_prev = m_sc[j]                                               # (R, 1)
        l_prev = l_sc[j]
        m_new = jnp.maximum(m_prev, jnp.max(s, axis=-1, keepdims=True))
        alpha = jnp.exp(m_prev - m_new)
        p = jnp.exp(s - m_new)
        l_sc[j] = alpha * l_prev + jnp.sum(p, axis=-1, keepdims=True)
        acc_sc[j] = alpha * acc_sc[j] + jax.lax.dot_general(
            p.astype(v_j.dtype), v_j, (((1,), (0,)), ((), ())),
            preferred_element_type=jnp.float32)                        # (R, D)
        m_sc[j] = m_new

    @pl.when(ki == pl.num_programs(2) - 1)
    def _():
        outs = []
        for h in range(num_heads):
            j, g = h // groups, h % groups
            acc_j = acc_sc[j]
            l_j = l_sc[j]
            acc_h = acc_j[g * tq:(g + 1) * tq, :]
            l_h = l_j[g * tq:(g + 1) * tq, :]
            outs.append(acc_h * pl.reciprocal(l_h))
        # One lane-dense (tq, nh*D) store — no per-head 32-lane masked stores.
        o_ref[...] = jnp.concatenate(outs, axis=-1).astype(o_ref.dtype)


def attention_core(q3, k3, v3, mask, *, num_heads, num_kv_heads, head_dim,
                   q_tile, kv_tile):
    """q3:(B,S,nh*D) bf16, k3/v3:(B,S,nkv*D) bf16, mask:(B,nh,S) f32 -> (B,S,nh*D) f32."""
    B, S, QD = q3.shape
    KD = k3.shape[-1]
    groups = num_heads // num_kv_heads
    R = groups * q_tile
    kernel = functools.partial(_attn_kernel, num_heads=num_heads,
                               num_kv_heads=num_kv_heads, head_dim=head_dim)
    return pl.pallas_call(
        kernel,
        out_shape=jax.ShapeDtypeStruct((B, S, QD), jnp.float32),
        grid=(B, S // q_tile, S // kv_tile),    # KV-tile axis last ("arbitrary")
        in_specs=[
            pl.BlockSpec((None, q_tile, QD), lambda b, qi, ki: (b, qi, 0)),
            pl.BlockSpec((None, kv_tile, KD), lambda b, qi, ki: (b, ki, 0)),
            pl.BlockSpec((None, kv_tile, KD), lambda b, qi, ki: (b, ki, 0)),
            pl.BlockSpec((None, num_heads, kv_tile), lambda b, qi, ki: (b, 0, ki)),
        ],
        out_specs=pl.BlockSpec((None, q_tile, QD), lambda b, qi, ki: (b, qi, 0)),
        scratch_shapes=[
            pltpu.VMEM((num_kv_heads, R, head_dim), jnp.float32),   # acc
            pltpu.VMEM((num_kv_heads, R, 1), jnp.float32),          # running max
            pltpu.VMEM((num_kv_heads, R, 1), jnp.float32),          # running sum
        ],
        compiler_params=pltpu.CompilerParams(
            dimension_semantics=("parallel", "parallel", "arbitrary"),
            vmem_limit_bytes=_vmem_limit(),
        ),
    )(q3, k3, v3, mask)


# -----------------------------------------------------------------------------
# Module forward (Pallas-backed)
# -----------------------------------------------------------------------------
def prepare_params(params):
    """One-time parameter setup: fuse Wq|Wk|Wv so each forward skips the concat."""
    p = dict(params)
    p["wqkv"] = jnp.concatenate([params["wq"], params["wk"], params["wv"]], axis=1)
    p["bqkv"] = jnp.concatenate(
        [params["bq"], params["bk"], params["bv"]]).reshape(1, -1)
    return p


def dma_forward(params, hidden_states, cos, sin, cfg):
    B, S, H = hidden_states.shape
    nh = cfg["num_attention_heads"]
    nkv = cfg["num_key_value_heads"]
    D = cfg["head_dim"]
    scale = D ** -0.5
    nq, nk = nh * D, nkv * D

    x2 = hidden_states.reshape(B * S, H)
    cos2 = cos.reshape(B * S, D)
    sin2 = sin.reshape(B * S, D)

    # Fused QKV projection + RoPE(+scale) epilogue; bf16 packed-head outputs.
    q2, k2, v2 = fused_qkv_rope(x2, params["wqkv"], params["bqkv"], cos2, sin2,
                                num_heads=nh, num_kv_heads=nkv, head_dim=D,
                                scale=scale)

    # dt_proj + dynamic additive mask: tiny (*, nh)-wide glue; a Pallas kernel here
    # would only emit masked <128-lane stores. Uses value states, as in PyTorch.
    dt2 = jnp.dot(v2.astype(jnp.float32), params["wdt"]) + params["bdt"]   # (B*S, nh)
    dyn = jnp.exp(params["A"] * jax.nn.softplus(dt2.reshape(B, S, nh)))    # (B, S, nh)
    attn_mask = jnp.transpose(dyn, (0, 2, 1))                              # (B, nh, S)
    # TODO(synk): kth-value thresholding (S > keep_window_size with dynamic_mask_ratio>0),
    # the optional external attention_mask, dropout and KV-cache update are not implemented.

    # Free reshapes only — head-major (B, nh, S, D) layouts are never materialized.
    q3 = q2.reshape(B, S, nq)
    k3 = k2.reshape(B, S, nk)
    v3 = v2.reshape(B, S, nk)

    tq = _pick_tile(S, (256, 128, 64, 32, 16, 8))
    tk = _pick_tile(S, (512, 256, 128))      # multiple of 128, or full S for small S
    attn = attention_core(q3, k3, v3, attn_mask, num_heads=nh, num_kv_heads=nkv,
                          head_dim=D, q_tile=tq, kv_tile=tk)

    out = linear(attn.reshape(B * S, nq), params["wo"], params["bo"])
    return out.reshape(B, S, H)


# -----------------------------------------------------------------------------
# Pure-JAX reference (sanity check, full f32)
# -----------------------------------------------------------------------------
def _rotate_half(x):
    half = x.shape[-1] // 2
    return jnp.concatenate([-x[..., half:], x[..., :half]], axis=-1)


def reference_forward(params, hidden_states, cos, sin, cfg):
    B, S, H = hidden_states.shape
    nh = cfg["num_attention_heads"]
    nkv = cfg["num_key_value_heads"]
    D = cfg["head_dim"]
    scale = D ** -0.5

    q = (hidden_states @ params["wq"] + params["bq"]).reshape(B, S, nh, D).transpose(0, 2, 1, 3)
    k = (hidden_states @ params["wk"] + params["bk"]).reshape(B, S, nkv, D).transpose(0, 2, 1, 3)
    v_flat = hidden_states @ params["wv"] + params["bv"]
    v = v_flat.reshape(B, S, nkv, D).transpose(0, 2, 1, 3)

    c = cos[:, None, :, :]
    s_ = sin[:, None, :, :]
    q = q * c + _rotate_half(q) * s_
    k = k * c + _rotate_half(k) * s_

    dt = v_flat @ params["wdt"] + params["bdt"]                      # (B, S, nh)
    dyn = jnp.exp(params["A"] * jax.nn.softplus(dt)).transpose(0, 2, 1)
    attn_mask = dyn[:, :, None, :]

    if nh != nkv:
        rep = nh // nkv
        k = jnp.repeat(k, rep, axis=1)
        v = jnp.repeat(v, rep, axis=1)

    scores = jnp.einsum("bhqd,bhkd->bhqk", q, k) * scale + attn_mask
    p = jax.nn.softmax(scores, axis=-1)
    o = jnp.einsum("bhqk,bhkd->bhqd", p, v)
    o = o.transpose(0, 2, 1, 3).reshape(B, S, nh * D)
    return (o @ params["wo"] + params["bo"]).reshape(B, S, H)


# -----------------------------------------------------------------------------
# Main
# -----------------------------------------------------------------------------
if __name__ == "__main__":
    cfg = dict(
        hidden_size=128,
        num_attention_heads=4,
        num_key_value_heads=4,   # groups=1 here; kernel supports nkv < nh via group batching
        head_dim=32,
        keep_window_size=2048,
        dynamic_mask_ratio=0.0,
        hidden_bias=True,
    )
    B, S = 2, 8
    H = cfg["hidden_size"]
    nh, nkv, D = cfg["num_attention_heads"], cfg["num_key_value_heads"], cfg["head_dim"]

    key = jax.random.PRNGKey(0)
    keys = jax.random.split(key, 16)

    def w(k_, shape, scl=0.05):
        return jax.random.normal(k_, shape, dtype=jnp.float32) * scl

    params = {
        "wq": w(keys[0], (H, nh * D)), "bq": w(keys[1], (nh * D,)),
        "wk": w(keys[2], (H, nkv * D)), "bk": w(keys[3], (nkv * D,)),
        "wv": w(keys[4], (H, nkv * D)), "bv": w(keys[5], (nkv * D,)),
        "wdt": w(keys[6], (nkv * D, nh)), "bdt": w(keys[7], (nh,)),
        "wo": w(keys[8], (nh * D, H)), "bo": w(keys[9], (H,)),
        "A": w(keys[10], (nh,), 0.1),
    }
    fused_params = prepare_params(params)   # hoisted out of the forward pass

    hidden_states = jax.random.normal(keys[11], (B, S, H), dtype=jnp.float32)

    # Rotary position embeddings: cos/sin of shape (B, S, head_dim)
    inv_freq = 1.0 / (10000.0 ** (jnp.arange(0, D, 2, dtype=jnp.float32) / D))
    pos = jnp.arange(S, dtype=jnp.float32)
    angles = pos[:, None] * inv_freq[None, :]            # (S, D/2)
    emb = jnp.concatenate([angles, angles], axis=-1)     # (S, D)
    cos = jnp.broadcast_to(jnp.cos(emb)[None], (B, S, D)).astype(jnp.float32)
    sin = jnp.broadcast_to(jnp.sin(emb)[None], (B, S, D)).astype(jnp.float32)

    out = dma_forward(fused_params, hidden_states, cos, sin, cfg)
    out = jax.block_until_ready(out)

    ref = reference_forward(params, hidden_states, cos, sin, cfg)
    # Tolerance relaxed because q/k/v are carried in bf16 (bf16 MXU inputs with f32
    # accumulation); softmax/normalization and all other math stay f32.
    np.testing.assert_allclose(np.asarray(out), np.asarray(ref), rtol=2e-2, atol=2e-2)

    print("KERNEL_OK")
</pallas_src>

<mosaic_0001>
module attributes {stable_mosaic.version = 11 : i64} {
  func.func @_qkv_rope_kernel(%arg0: i32, %arg1: memref<16x128xf32, #tpu.memory_space<vmem>>, %arg2: memref<128x384xf32, #tpu.memory_space<vmem>>, %arg3: memref<1x384xf32, #tpu.memory_space<vmem>>, %arg4: memref<16x32xf32, #tpu.memory_space<vmem>>, %arg5: memref<16x32xf32, #tpu.memory_space<vmem>>, %arg6: memref<16x128xbf16, #tpu.memory_space<vmem>>, %arg7: memref<16x128xbf16, #tpu.memory_space<vmem>>, %arg8: memref<16x128xbf16, #tpu.memory_space<vmem>>) attributes {dimension_semantics = [#tpu.dimension_semantics<parallel>], iteration_bounds = array<i64: 1>, scalar_prefetch = 0 : i64, scratch_operands = 0 : i64, tpu.core_type = #tpu.core_type<tc>, window_params = [{transform_indices = @transform_0, window_bounds = array<i64: 16, 128>}, {pipeline_mode = #tpu.pipeline_mode<synchronous>, transform_indices = @transform_1, window_bounds = array<i64: 128, 384>}, {pipeline_mode = #tpu.pipeline_mode<synchronous>, transform_indices = @transform_2, window_bounds = array<i64: 1, 384>}, {transform_indices = @transform_3, window_bounds = array<i64: 16, 32>}, {transform_indices = @transform_4, window_bounds = array<i64: 16, 32>}, {transform_indices = @transform_5, window_bounds = array<i64: 16, 128>}, {transform_indices = @transform_6, window_bounds = array<i64: 16, 128>}, {transform_indices = @transform_7, window_bounds = array<i64: 16, 128>}]} {
    %c0 = arith.constant 0 : index
    %c0_0 = arith.constant 0 : index
    %0 = vector.load %arg1[%c0, %c0_0] : memref<16x128xf32, #tpu.memory_space<vmem>>, vector<16x128xf32>
    %c0_1 = arith.constant 0 : index
    %c0_2 = arith.constant 0 : index
    %1 = vector.load %arg2[%c0_1, %c0_2] : memref<128x384xf32, #tpu.memory_space<vmem>>, vector<128x384xf32>
    %cst = arith.constant dense<0.000000e+00> : vector<16x384xf32>
    %2 = tpu.matmul %0, %1, %cst {dimension_numbers = #tpu.dot_dimension_numbers<[1], [0], [0], [1], [0, 0, 1, 1], [], []>} : vector<16x128xf32>, vector<128x384xf32>, vector<16x384xf32> -> vector<16x384xf32>
    %c0_3 = arith.constant 0 : index
    %c0_4 = arith.constant 0 : index
    %3 = vector.load %arg3[%c0_3, %c0_4] : memref<1x384xf32, #tpu.memory_space<vmem>>, vector<1x384xf32>
    %4 = vector.broadcast %3 : vector<1x384xf32> to vector<16x384xf32>
    %5 = arith.addf %2, %4 : vector<16x384xf32>
    %c0_5 = arith.constant 0 : index
    %c0_6 = arith.constant 0 : index
    %6 = vector.load %arg4[%c0_5, %c0_6] : memref<16x32xf32, #tpu.memory_space<vmem>>, vector<16x32xf32>
    %c0_7 = arith.constant 0 : index
    %c0_8 = arith.constant 0 : index
    %7 = vector.load %arg5[%c0_7, %c0_8] : memref<16x32xf32, #tpu.memory_space<vmem>>, vector<16x32xf32>
    %8 = vector.extract_strided_slice %5 {offsets = [0, 0], sizes = [16, 32], strides = [1, 1]} : vector<16x384xf32> to vector<16x32xf32>
    %9 = vector.extract_strided_slice %8 {offsets = [0, 16], sizes = [16, 16], strides = [1, 1]} : vector<16x32xf32> to vector<16x16xf32>
    %cst_9 = arith.constant 0.000000e+00 : f32
    %10 = vector.broadcast %cst_9 : f32 to vector<16x16xf32>
    %11 = arith.subf %10, %9 : vector<16x16xf32>
    %12 = vector.extract_strided_slice %8 {offsets = [0, 0], sizes = [16, 16], strides = [1, 1]} : vector<16x32xf32> to vector<16x16xf32>
    %13 = tpu.concatenate %11, %12 in 1 : vector<16x16xf32>, vector<16x16xf32> -> vector<16x32xf32>
    %14 = arith.mulf %8, %6 : vector<16x32xf32>
    %15 = arith.mulf %13, %7 : vector<16x32xf32>
    %16 = arith.addf %14, %15 : vector<16x32xf32>
    %cst_10 = arith.constant 0.176776692 : f32
    %17 = vector.broadcast %cst_10 : f32 to vector<16x32xf32>
    %18 = arith.mulf %16, %17 : vector<16x32xf32>
    %19 = vector.extract_strided_slice %5 {offsets = [0, 32], sizes = [16, 32], strides = [1, 1]} : vector<16x384xf32> to vector<16x32xf32>
    %20 = vector.extract_strided_slice %19 {offsets = [0, 16], sizes = [16, 16], strides = [1, 1]} : vector<16x32xf32> to vector<16x16xf32>
    %cst_11 = arith.constant 0.000000e+00 : f32
    %21 = vector.broadcast %cst_11 : f32 to vector<16x16xf32>
    %22 = arith.subf %21, %20 : vector<16x16xf32>
    %23 = vector.extract_strided_slice %19 {offsets = [0, 0], sizes = [16, 16], strides = [1, 1]} : vector<16x32xf32> to vector<16x16xf32>
    %24 = tpu.concatenate %22, %23 in 1 : vector<16x16xf32>, vector<16x16xf32> -> vector<16x32xf32>
    %25 = arith.mulf %19, %6 : vector<16x32xf32>
    %26 = arith.mulf %24, %7 : vector<16x32xf32>
    %27 = arith.addf %25, %26 : vector<16x32xf32>
    %cst_12 = arith.constant 0.176776692 : f32
    %28 = vector.broadcast %cst_12 : f32 to vector<16x32xf32>
    %29 = arith.mulf %27, %28 : vector<16x32xf32>
    %30 = vector.extract_strided_slice %5 {offsets = [0, 64], sizes = [16, 32], strides = [1, 1]} : vector<16x384xf32> to vector<16x32xf32>
    %31 = vector.extract_strided_slice %30 {offsets = [0, 16], sizes = [16, 16], strides = [1, 1]} : vector<16x32xf32> to vector<16x16xf32>
    %cst_13 = arith.constant 0.000000e+00 : f32
    %32 = vector.broadcast %cst_13 : f32 to vector<16x16xf32>
    %33 = arith.subf %32, %31 : vector<16x16xf32>
    %34 = vector.extract_strided_slice %30 {offsets = [0, 0], sizes = [16, 16], strides = [1, 1]} : vector<16x32xf32> to vector<16x16xf32>
    %35 = tpu.concatenate %33, %34 in 1 : vector<16x16xf32>, vector<16x16xf32> -> vector<16x32xf32>
    %36 = arith.mulf %30, %6 : vector<16x32xf32>
    %37 = arith.mulf %35, %7 : vector<16x32xf32>
    %38 = arith.addf %36, %37 : vector<16x32xf32>
    %cst_14 = arith.constant 0.176776692 : f32
    %39 = vector.broadcast %cst_14 : f32 to vector<16x32xf32>
    %40 = arith.mulf %38, %39 : vector<16x32xf32>
    %41 = vector.extract_strided_slice %5 {offsets = [0, 96], sizes = [16, 32], strides = [1, 1]} : vector<16x384xf32> to vector<16x32xf32>
    %42 = vector.extract_strided_slice %41 {offsets = [0, 16], sizes = [16, 16], strides = [1, 1]} : vector<16x32xf32> to vector<16x16xf32>
    %cst_15 = arith.constant 0.000000e+00 : f32
    %43 = vector.broadcast %cst_15 : f32 to vector<16x16xf32>
    %44 = arith.subf %43, %42 : vector<16x16xf32>
    %45 = vector.extract_strided_slice %41 {offsets = [0, 0], sizes = [16, 16], strides = [1, 1]} : vector<16x32xf32> to vector<16x16xf32>
    %46 = tpu.concatenate %44, %45 in 1 : vector<16x16xf32>, vector<16x16xf32> -> vector<16x32xf32>
    %47 = arith.mulf %41, %6 : vector<16x32xf32>
    %48 = arith.mulf %46, %7 : vector<16x32xf32>
    %49 = arith.addf %47, %48 : vector<16x32xf32>
    %cst_16 = arith.constant 0.176776692 : f32
    %50 = vector.broadcast %cst_16 : f32 to vector<16x32xf32>
    %51 = arith.mulf %49, %50 : vector<16x32xf32>
    %52 = vector.extract_strided_slice %5 {offsets = [0, 128], sizes = [16, 32], strides = [1, 1]} : vector<16x384xf32> to vector<16x32xf32>
    %53 = vector.extract_strided_slice %52 {offsets = [0, 16], sizes = [16, 16], strides = [1, 1]} : vector<16x32xf32> to vector<16x16xf32>
    %cst_17 = arith.constant 0.000000e+00 : f32
    %54 = vector.broadcast %cst_17 : f32 to vector<16x16xf32>
    %55 = arith.subf %54, %53 : vector<16x16xf32>
    %56 = vector.extract_strided_slice %52 {offsets = [0, 0], sizes = [16, 16], strides = [1, 1]} : vector<16x32xf32> to vector<16x16xf32>
    %57 = tpu.concatenate %55, %56 in 1 : vector<16x16xf32>, vector<16x16xf32> -> vector<16x32xf32>
    %58 = arith.mulf %52, %6 : vector<16x32xf32>
    %59 = arith.mulf %57, %7 : vector<16x32xf32>
    %60 = arith.addf %58, %59 : vector<16x32xf32>
    %61 = vector.extract_strided_slice %5 {offsets = [0, 160], sizes = [16, 32], strides = [1, 1]} : vector<16x384xf32> to vector<16x32xf32>
    %62 = vector.extract_strided_slice %61 {offsets = [0, 16], sizes = [16, 16], strides = [1, 1]} : vector<16x32xf32> to vector<16x16xf32>
    %cst_18 = arith.constant 0.000000e+00 : f32
    %63 = vector.broadcast %cst_18 : f32 to vector<16x16xf32>
    %64 = arith.subf %63, %62 : vector<16x16xf32>
    %65 = vector.extract_strided_slice %61 {offsets = [0, 0], sizes = [16, 16], strides = [1, 1]} : vector<16x32xf32> to vector<16x16xf32>
    %66 = tpu.concatenate %64, %65 in 1 : vector<16x16xf32>, vector<16x16xf32> -> vector<16x32xf32>
    %67 = arith.mulf %61, %6 : vector<16x32xf32>
    %68 = arith.mulf %66, %7 : vector<16x32xf32>
    %69 = arith.addf %67, %68 : vector<16x32xf32>
    %70 = vector.extract_strided_slice %5 {offsets = [0, 192], sizes = [16, 32], strides = [1, 1]} : vector<16x384xf32> to vector<16x32xf32>
    %71 = vector.extract_strided_slice %70 {offsets = [0, 16], sizes = [16, 16], strides = [1, 1]} : vector<16x32xf32> to vector<16x16xf32>
    %cst_19 = arith.constant 0.000000e+00 : f32
    %72 = vector.broadcast %cst_19 : f32 to vector<16x16xf32>
    %73 = arith.subf %72, %71 : vector<16x16xf32>
    %74 = vector.extract_strided_slice %70 {offsets = [0, 0], sizes = [16, 16], strides = [1, 1]} : vector<16x32xf32> to vector<16x16xf32>
    %75 = tpu.concatenate %73, %74 in 1 : vector<16x16xf32>, vector<16x16xf32> -> vector<16x32xf32>
    %76 = arith.mulf %70, %6 : vector<16x32xf32>
    %77 = arith.mulf %75, %7 : vector<16x32xf32>
    %78 = arith.addf %76, %77 : vector<16x32xf32>
    %79 = vector.extract_strided_slice %5 {offsets = [0, 224], sizes = [16, 32], strides = [1, 1]} : vector<16x384xf32> to vector<16x32xf32>
    %80 = vector.extract_strided_slice %79 {offsets = [0, 16], sizes = [16, 16], strides = [1, 1]} : vector<16x32xf32> to vector<16x16xf32>
    %cst_20 = arith.constant 0.000000e+00 : f32
    %81 = vector.broadcast %cst_20 : f32 to vector<16x16xf32>
    %82 = arith.subf %81, %80 : vector<16x16xf32>
    %83 = vector.extract_strided_slice %79 {offsets = [0, 0], sizes = [16, 16], strides = [1, 1]} : vector<16x32xf32> to vector<16x16xf32>
    %84 = tpu.concatenate %82, %83 in 1 : vector<16x16xf32>, vector<16x16xf32> -> vector<16x32xf32>
    %85 = arith.mulf %79, %6 : vector<16x32xf32>
    %86 = arith.mulf %84, %7 : vector<16x32xf32>
    %87 = arith.addf %85, %86 : vector<16x32xf32>
    %88 = tpu.concatenate %18, %29, %40, %51 in 1 : vector<16x32xf32>, vector<16x32xf32>, vector<16x32xf32>, vector<16x32xf32> -> vector<16x128xf32>
    %89 = arith.truncf %88 : vector<16x128xf32> to vector<16x128xbf16>
    %c0_21 = arith.constant 0 : index
    %c0_22 = arith.constant 0 : index
    %90 = vector.load %arg6[%c0_21, %c0_22] : memref<16x128xbf16, #tpu.memory_space<vmem>>, vector<16x128xbf16>
    tpu.vector_store %arg6[%c0_21, %c0_22], %89 {strides = array<i32>} : memref<16x128xbf16, #tpu.memory_space<vmem>>, vector<16x128xbf16>,
    %91 = tpu.concatenate %60, %69, %78, %87 in 1 : vector<16x32xf32>, vector<16x32xf32>, vector<16x32xf32>, vector<16x32xf32> -> vector<16x128xf32>
    %92 = arith.truncf %91 : vector<16x128xf32> to vector<16x128xbf16>
    %c0_23 = arith.constant 0 : index
    %c0_24 = arith.constant 0 : index
    %93 = vector.load %arg7[%c0_23, %c0_24] : memref<16x128xbf16, #tpu.memory_space<vmem>>, vector<16x128xbf16>
    tpu.vector_store %arg7[%c0_23, %c0_24], %92 {strides = array<i32>} : memref<16x128xbf16, #tpu.memory_space<vmem>>, vector<16x128xbf16>,
    %94 = vector.extract_strided_slice %5 {offsets = [0, 256], sizes = [16, 128], strides = [1, 1]} : vector<16x384xf32> to vector<16x128xf32>
    %95 = arith.truncf %94 : vector<16x128xf32> to vector<16x128xbf16>
    %c0_25 = arith.constant 0 : index
    %c0_26 = arith.constant 0 : index
    %96 = vector.load %arg8[%c0_25, %c0_26] : memref<16x128xbf16, #tpu.memory_space<vmem>>, vector<16x128xbf16>
    tpu.vector_store %arg8[%c0_25, %c0_26], %95 {strides = array<i32>} : memref<16x128xbf16, #tpu.memory_space<vmem>>, vector<16x128xbf16>,
    return
  }
  func.func @transform_0(%arg0: i32) -> (i32, i32) {
    %c0_i32 = arith.constant 0 : i32
    %c0_i32_0 = arith.constant 0 : i32
    return %arg0, %c0_i32 : i32, i32
  }
  func.func @transform_1(%arg0: i32) -> (i32, i32) {
    %c0_i32 = arith.constant 0 : i32
    %c0_i32_0 = arith.constant 0 : i32
    %c0_i32_1 = arith.constant 0 : i32
    return %c0_i32, %c0_i32_0 : i32, i32
  }
  func.func @transform_2(%arg0: i32) -> (i32, i32) {
    %c0_i32 = arith.constant 0 : i32
    %c0_i32_0 = arith.constant 0 : i32
    %c0_i32_1 = arith.constant 0 : i32
    return %c0_i32, %c0_i32_0 : i32, i32
  }
  func.func @transform_3(%arg0: i32) -> (i32, i32) {
    %c0_i32 = arith.constant 0 : i32
    %c0_i32_0 = arith.constant 0 : i32
    return %arg0, %c0_i32 : i32, i32
  }
  func.func @transform_4(%arg0: i32) -> (i32, i32) {
    %c0_i32 = arith.constant 0 : i32
    %c0_i32_0 = arith.constant 0 : i32
    return %arg0, %c0_i32 : i32, i32
  }
  func.func @transform_5(%arg0: i32) -> (i32, i32) {
    %c0_i32 = arith.constant 0 : i32
    %c0_i32_0 = arith.constant 0 : i32
    return %arg0, %c0_i32 : i32, i32
  }
  func.func @transform_6(%arg0: i32) -> (i32, i32) {
    %c0_i32 = arith.constant 0 : i32
    %c0_i32_0 = arith.constant 0 : i32
    return %arg0, %c0_i32 : i32, i32
  }
  func.func @transform_7(%arg0: i32) -> (i32, i32) {
    %c0_i32 = arith.constant 0 : i32
    %c0_i32_0 = arith.constant 0 : i32
    return %arg0, %c0_i32 : i32, i32
  }
}

</mosaic_0001>

<bundles_post_ra>
// kernel: tpu_custom_call.1
= control target key start
LH: loop header
LB: loop body
LE: loop exit
PB: predicated region body
PF: predicated region fallthrough
CT: control target
= control target key end

     0   :  { %13 = vsyncpa [#allocation3], 0  ;;  %s1314_s0 = inlined_call_operand.hbm [shape: f32[16,128], index: 0, kind: input, shape index: {}]   ;;  %s1315_s1 = inlined_call_operand.hbm [shape: f32[128,384], index: 1, kind: input, shape index: {}]   ;;  %s1316_s2 = inlined_call_operand.vmem [shape: f32[1,384], index: 2, kind: input, shape index: {}]   ;;  %s1317_s3 = inlined_call_operand.hbm [shape: f32[16,32], index: 3, kind: input, shape index: {}]   ;;  %s1318_s4 = inlined_call_operand.hbm [shape: f32[16,32], index: 4, kind: input, shape index: {}]   ;;  %s1319_s5 = inlined_call_operand.hbm [shape: bf16[16,128], index: 5, kind: output, shape index: {0}]   ;;  %s1320_s6 = inlined_call_operand.hbm [shape: bf16[16,128], index: 6, kind: output, shape index: {1}]   ;;  %s1321_s7 = inlined_call_operand.hbm [shape: bf16[16,128], index: 7, kind: output, shape index: {2}]  }
   0x1   :  { %14 = vsyncpa [#allocation6], 0 }
   0x2   :  { %15 = vsyncpa [#allocation9], 0 }
   0x3   :  { %16 = vsyncpa [#allocation4], 0 }
   0x4   :  { %17 = vsyncpa [#allocation12], 0  ;;  %s975_s24 = smov [#allocation5]   ;;  %s811_s28 = scalar_lea.hbm %s1315_s1, 6144 }
   0x5   :  { %s35_s25 = sshll.u32 %s975_s24, 4  ;;  %p812_p0 = scmp.ne.s32.totalorder %s1315_s1, %s811_s28  ;;  %s36_s25 = int_to_ptr.vmem [resolvable:$true] %s35_s25 }
   0x6   :  { %p815_p1 = scmp.lt.u32.totalorder %s811_s28, %s1315_s1 }
   0x8   :  { %p817_p2 = pnand %p815_p1, %p812_p0 }
   0xa   :  { %820 = shalt.err (!%p817_p2)
}
   0xb   :  { %s821_s10 = scalar_lea.vmem %s36_s25, 6144  ;;  %p826_p4 = scmp.lt.s32.totalorder %s36_s25, %s36_s25 }
   0xc   :  { %p822_p3 = scmp.ne.s32.totalorder %s36_s25, %s821_s10  ;;  %p827_p5 = scmp.lt.s32.totalorder %s821_s10, %s821_s10 }
   0xe   :  { %p828_p6 = por %p827_p5, %p826_p4 }
  0x10   :  { %p829_p7 = pnand %p828_p6, %p822_p3 }
  0x12   :  { %832 = shalt.err (!%p829_p7)
}
  0x13   :  { %s976_s11 = smov 384   ;;  %s977_s12 = smov 24  }
  0x14   :  { %41 = dma.hbm_to_vmem [thread:$0]  %s1315_s1, 6144, %s36_s25, [#allocation6], %s976_s11, %s976_s11, %s977_s12  }
  0x15   :  { %s978_s15 = smov [#allocation2]   ;;  %s833_s19 = scalar_lea.hbm %s1314_s0, 256 }
  0x16   :  { %s23_s16 = sshll.u32 %s978_s15, 4  ;;  %p834_p8 = scmp.ne.s32.totalorder %s1314_s0, %s833_s19  ;;  %s24_s16 = int_to_ptr.vmem [resolvable:$true] %s23_s16 }
  0x17   :  { %p837_p9 = scmp.lt.u32.totalorder %s833_s19, %s1314_s0 }
  0x19   :  { %p839_p10 = pnand %p837_p9, %p834_p8 }
  0x1b   :  { %842 = shalt.err (!%p839_p10)
}
  0x1c   :  { %s843_s24 = scalar_lea.vmem %s24_s16, 256  ;;  %p848_p12 = scmp.lt.s32.totalorder %s24_s16, %s24_s16 }
  0x1d   :  { %p844_p11 = scmp.ne.s32.totalorder %s24_s16, %s843_s24  ;;  %p849_p13 = scmp.lt.s32.totalorder %s843_s24, %s843_s24 }
  0x1f   :  { %p850_p0 = por %p849_p13, %p848_p12 }
  0x21   :  { %p851_p1 = pnand %p850_p0, %p844_p11 }
  0x23   :  { %854 = shalt.err (!%p851_p1)
}
  0x24   :  { %s979_s1 = smov 128   ;;  %s980_s25 = smov 8  }
  0x25   :  { %29 = dma.hbm_to_vmem [thread:$0]  %s1314_s0, 256, %s24_s16, [#allocation3], %s979_s1, %s979_s1, %s980_s25  }
  0x26   :  { %s981_s28 = smov [#allocation7]   ;;  %s982_s30 = smov [#allocation8]  }
  0x27   :  { %s49_s29 = sshll.u32 %s981_s28, 4  ;;  %s61_s8 = sshll.u32 %s982_s30, 4  ;;  %s50_s29 = int_to_ptr.vmem [resolvable:$true] %s49_s29  ;;  %s1062_s8 = int_to_ptr.vmem [resolvable:$true] %s61_s8 }
  0x28   :  { %s855_s11 = scalar_lea.hbm %s1317_s3, 256 }
  0x29   :  { %p856_p2 = scmp.ne.s32.totalorder %s1317_s3, %s855_s11  ;;  %p859_p3 = scmp.lt.u32.totalorder %s855_s11, %s1317_s3 }
  0x2b   :  { %p861_p4 = pnand %p859_p3, %p856_p2 }
  0x2d   :  { %864 = shalt.err (!%p861_p4)
}
  0x2e   :  { %s865_s0 = scalar_lea.vmem %s50_s29, 256  ;;  %p870_p6 = scmp.lt.s32.totalorder %s50_s29, %s50_s29 }
  0x2f   :  { %p866_p5 = scmp.ne.s32.totalorder %s50_s29, %s865_s0  ;;  %p871_p7 = scmp.lt.s32.totalorder %s865_s0, %s865_s0 }
  0x31   :  { %p872_p8 = por %p871_p7, %p870_p6 }
  0x33   :  { %p873_p9 = pnand %p872_p8, %p866_p5 }
  0x35   :  { %876 = shalt.err (!%p873_p9)
}
  0x36   :  { %55 = dma.hbm_to_vmem [thread:$0]  %s1317_s3, 256, %s50_s29, [#allocation6], %s979_s1, %s979_s1, %s980_s25  }
  0x37   :  { %s877_s20 = scalar_lea.hbm %s1318_s4, 256 }
  0x38   :  { %p878_p10 = scmp.ne.s32.totalorder %s1318_s4, %s877_s20  ;;  %p881_p11 = scmp.lt.u32.totalorder %s877_s20, %s1318_s4 }
  0x3a   :  { %p883_p12 = pnand %p881_p11, %p878_p10 }
  0x3c   :  { %886 = shalt.err (!%p883_p12)
}
  0x3d   :  { %s887_s26 = scalar_lea.vmem %s1062_s8, 256  ;;  %p892_p0 = scmp.lt.s32.totalorder %s1062_s8, %s1062_s8 }
  0x3e   :  { %p888_p13 = scmp.ne.s32.totalorder %s1062_s8, %s887_s26  ;;  %p893_p1 = scmp.lt.s32.totalorder %s887_s26, %s887_s26 }
  0x40   :  { %p894_p2 = por %p893_p1, %p892_p0 }
  0x42   :  { %p895_p3 = pnand %p894_p2, %p888_p13 }
  0x44   :  { %898 = shalt.err (!%p895_p3)
}
  0x45   :  { %67 = dma.hbm_to_vmem [thread:$0]  %s1318_s4, 256, %s1062_s8, [#allocation9], %s979_s1, %s979_s1, %s980_s25  }
  0x46   :  { %965 = dma.done.wait [#allocation3], 256  }
  0x47   :  { %966 = vsyncadd [#allocation3], 4294967040 }
  0x48   :  { %967 = dma.done.wait [#allocation6], 6400  }
  0x49   :  { %968 = vsyncadd [#allocation6], 4294960896 }
  0x4a   :  { %969 = dma.done.wait [#allocation9], 256  }
  0x4b   :  { %970 = vsyncadd [#allocation9], 4294967040  ;;  %v983_v0 = vmov 0.0   ;;  %v83_v1 = vld [vmem:[#allocation5 + $0x8] sm:$0xff]  ;;  %v86_v2 = vld [vmem:[#allocation5 + $0x20] sm:$0xff]  ;;  %s984_s25 = smov 80  }
  0x4c   :  { %211 = vmatprep.mubr.f32.mxu0 %v983_v0  ;;  %v82_v3 = vld [vmem:[#allocation5] sm:$0xff]  ;;  %v727_v4 = vpack.c.bf16 %v86_v2, %v83_v1  ;;  %v85_v5 = vld [vmem:[#allocation5 + $0x18] sm:$0xff]  ;;  %v92_v7 = vld [vmem:[#allocation5 + $0x50] sm:$0xff]  ;;  %s985_s28 = smov 112   ;;  %s987_s29 = smov 16   ;;  %vm321_vm0 = vcmask 130048  }
  0x4d   :  { %v89_v6 = vld [vmem:[#allocation5 + $0x38] sm:$0xff]  ;;  %v729_v8 = vpack.c.bf16 %v85_v5, %v82_v3  ;;  %v88_v10 = vld [vmem:[#allocation5 + $0x30] sm:$0xff]  ;;  %v91_v11 = vld [vmem:[#allocation5 + $0x48] sm:$0xff]  ;;  %s988_s30 = smov 32   ;;  %s989_s8 = smov 64   ;;  %vm552_vm1 = vcmask 261120  }
  0x4e   :  { %v731_v9 = vpack.c.bf16 %v92_v7, %v89_v6  ;;  %v95_v12 = vld [vmem:[#allocation5 + $0x68] sm:$0xff]  ;;  %728 = vmatprep.subr.bf16.mxu0 %v727_v4  ;;  %v98_v13 = vld [vmem:[#allocation5 + $0x80] sm:$0xff]  ;;  %v733_v14 = vpack.c.bf16 %v91_v11, %v88_v10  ;;  %v97_v17 = vld [vmem:[#allocation5 + $0x78] sm:$0xff]  ;;  %v132_v11 = vlaneseq  ;;  %s990_s9 = smov 96   ;;  %vm555_vm2 = vcmask 523264   ;;  %s991_s10 = smov [#allocation10]  }
  0x4f   :  { %730 = vmatpush1.bf16.msra.mxu0 %v729_v8  ;;  %v735_v15 = vpack.c.bf16 %v98_v13, %v95_v12  ;;  %v94_v16 = vld [vmem:[#allocation5 + $0x60] sm:$0xff]  ;;  %v101_v18 = vld [vmem:[#allocation5 + $0x98] sm:$0xff]  ;;  %v104_v19 = vld [vmem:[#allocation5 + $0xb0] sm:$0xff]  ;;  %vm558_vm3 = vcmask 785408   ;;  %s602_s11 = sshll.u32 %s991_s10, 4  ;;  %s603_s11 = int_to_ptr.vmem [resolvable:$true] %s602_s11 }
  0x50   :  { %732 = vmatprep.subr.bf16.mxu0 %v731_v9  ;;  %v737_v20 = vpack.c.bf16 %v97_v17, %v94_v16  ;;  %v739_v21 = vpack.c.bf16 %v104_v19, %v101_v18  ;;  %v100_v22 = vld [vmem:[#allocation5 + $0x90] sm:$0xff]  ;;  %v103_v23 = vld [vmem:[#allocation5 + $0xa8] sm:$0xff]  ;;  %v110_v25 = vld [vmem:[#allocation5 + $0xe0] sm:$0xff]  ;;  %v1101_v12 = vshrl.u32 %v132_v11, 7  ;;  %s899_s12 = scalar_lea.vmem %s603_s11, 128  ;;  %p904_p5 = scmp.lt.s32.totalorder %s603_s11, %s603_s11 }
  0x51   :  { %v107_v24 = vld [vmem:[#allocation5 + $0xc8] sm:$0xff]  ;;  %v80_v26 = vld [vmem:[#allocation2] sm:$0xff]  ;;  %v741_v27 = vpack.c.bf16 %v103_v23, %v100_v22  ;;  %v106_v29 = vld [vmem:[#allocation5 + $0xc0] sm:$0xff]  ;;  %p900_p4 = scmp.ne.s32.totalorder %s603_s11, %s899_s12  ;;  %p905_p6 = scmp.lt.s32.totalorder %s899_s12, %s899_s12 }
  0x52   :  { %724 = vmatprep.mubr.f32.mxu1 %v80_v26  ;;  %v743_v28 = vpack.c.bf16 %v110_v25, %v107_v24  ;;  %v109_v30 = vld [vmem:[#allocation5 + $0xd8] sm:$0xff]  ;;  %v116_v32 = vld [vmem:[#allocation5 + $0x110] sm:$0xff]  ;;  %v115_v36 = vld [vmem:[#allocation5 + $0x108] sm:$0xff]  ;;  %v134_v13 = vsub.s32 0, %v1101_v12  ;;  %v138_v18 = vsub.s32 1, %v1101_v12 }
  0x53   :  { %734 = vmatpush1.bf16.msra.mxu0 %v733_v14  ;;  %v113_v31 = vld [vmem:[#allocation5 + $0xf8] sm:$0xff]  ;;  %v745_v33 = vpack.c.bf16 %v109_v30, %v106_v29  ;;  %v112_v35 = vld [vmem:[#allocation5 + $0xf0] sm:$0xff]  ;;  %v119_v37 = vld [vmem:[#allocation5 + $0x128] sm:$0xff]  ;;  %p906_p7 = por %p905_p6, %p904_p5 }
  0x54   :  { %736 = vmatprep.subr.bf16.mxu0 %v735_v15  ;;  %v747_v34 = vpack.c.bf16 %v116_v32, %v113_v31  ;;  %v122_v38 = vld [vmem:[#allocation5 + $0x140] sm:$0xff]  ;;  %v749_v39 = vpack.c.bf16 %v115_v36, %v112_v35  ;;  %v121_v42 = vld [vmem:[#allocation5 + $0x138] sm:$0xff]  ;;  %v128_v44 = vld [vmem:[#allocation5 + $0x170] sm:$0xff] }
  0x55   :  { %v751_v40 = vpack.c.bf16 %v122_v38, %v119_v37  ;;  %v118_v41 = vld [vmem:[#allocation5 + $0x120] sm:$0xff]  ;;  %v125_v43 = vld [vmem:[#allocation5 + $0x158] sm:$0xff]  ;;  %v124_v47 = vld [vmem:[#allocation5 + $0x150] sm:$0xff]  ;;  %p907_p8 = pnand %p906_p7, %p900_p4 }
  0x56   :  { %v753_v45 = vpack.c.bf16 %v121_v42, %v118_v41  ;;  %v755_v46 = vpack.c.bf16 %v128_v44, %v125_v43  ;;  %v127_v48 = vld [vmem:[#allocation5 + $0x168] sm:$0xff]  ;;  %v81_v50 = vld [vmem:[#allocation2 + $0x8] sm:$0xff]  ;;  %v84_v51 = vld [vmem:[#allocation5 + $0x10] sm:$0xff] }
  0x57   :  { %738 = vmatpush1.bf16.msra.mxu0 %v737_v20  ;;  %v757_v49 = vpack.c.bf16 %v127_v48, %v124_v47  ;;  %v87_v52 = vld [vmem:[#allocation5 + $0x28] sm:$0xff]  ;;  %v90_v54 = vld [vmem:[#allocation5 + $0x40] sm:$0xff]  ;;  %v93_v55 = vld [vmem:[#allocation5 + $0x58] sm:$0xff] }
  0x58   :  { %740 = vmatprep.subr.bf16.mxu0 %v739_v21  ;;  %v759_v53 = vpack.c.bf16 %v87_v52, %v84_v51  ;;  %v763_v56 = vpack.c.bf16 %v93_v55, %v90_v54  ;;  %v96_v57 = vld [vmem:[#allocation5 + $0x70] sm:$0xff]  ;;  %v99_v58 = vld [vmem:[#allocation5 + $0x88] sm:$0xff]  ;;  %v102_v60 = vld [vmem:[#allocation5 + $0xa0] sm:$0xff] }
  0x59   :  { %v767_v59 = vpack.c.bf16 %v99_v58, %v96_v57  ;;  %v105_v61 = vld [vmem:[#allocation5 + $0xb8] sm:$0xff]  ;;  %v108_v63 = vld [vmem:[#allocation5 + $0xd0] sm:$0xff]  ;;  %v114_v2 = vld [vmem:[#allocation5 + $0x100] sm:$0xff] }
  0x5a   :  { %760 = vmatprep.subr.bf16.mxu1 %v759_v53  ;;  %v771_v62 = vpack.c.bf16 %v105_v61, %v102_v60  ;;  %v117_v3 = vld [vmem:[#allocation5 + $0x118] sm:$0xff]  ;;  %v120_v5 = vld [vmem:[#allocation5 + $0x130] sm:$0xff]  ;;  %v123_v6 = vld [vmem:[#allocation5 + $0x148] sm:$0xff] }
  0x5b   :  { %742 = vmatpush1.bf16.msra.mxu0 %v741_v27  ;;  %762 = vmatpush3.bf16.msra.mxu1 %v759_v53  ;;  %v779_v4 = vpack.c.bf16 %v117_v3, %v114_v2  ;;  %v783_v7 = vpack.c.bf16 %v123_v6, %v120_v5  ;;  %v126_v8 = vld [vmem:[#allocation5 + $0x160] sm:$0xff]  ;;  %v129_v9 = vld [vmem:[#allocation5 + $0x178] sm:$0xff]  ;;  %v1107_v14 = vld [vmem:[%s1316_s2] sm:$0x7]  ;;  %s986_s2 = smov 48  }
  0x5c   :  { %744 = vmatprep.subr.bf16.mxu0 %v743_v28  ;;  %764 = vmatprep.subr.bf16.mxu1 %v763_v56  ;;  %v787_v10 = vpack.c.bf16 %v129_v9, %v126_v8  ;;  %v135_v15 = vrot.slane %v1107_v14, %v134_v13  ;;  %v139_v21 = vrot.slane %v1107_v14, %v138_v18  ;;  %v1152_v30 = vld [vmem:[#allocation7 + $0x8] sm:$0xff]  ;;  %v1154_v31 = vld [vmem:[#allocation7] sm:$0xff] }
  0x5f   :  { %746 = vmatpush1.bf16.msra.mxu0 %v745_v33  ;;  %766 = vmatpush3.bf16.msra.mxu1 %v763_v56 }
  0x60   :  { %748 = vmatprep.subr.bf16.mxu0 %v747_v34  ;;  %768 = vmatprep.subr.bf16.mxu1 %v767_v59 }
  0x63   :  { %750 = vmatpush1.bf16.msra.mxu0 %v749_v39  ;;  %770 = vmatpush3.bf16.msra.mxu1 %v767_v59 }
  0x64   :  { %752 = vmatprep.subr.bf16.mxu0 %v751_v40  ;;  %772 = vmatprep.subr.bf16.mxu1 %v771_v62  ;;  %v1172_v40 = vld [vmem:[#allocation8] sm:$0xff] }
  0x67   :  { %754 = vmatpush1.bf16.msra.mxu0 %v753_v45  ;;  %774 = vmatpush3.bf16.msra.mxu1 %v771_v62 }
  0x68   :  { %756 = vmatprep.subr.bf16.mxu0 %v755_v46 }
  0x6b   :  { %758 = vmatpush1.bf16.msra.mxu0 %v757_v49 }
  0x6e   :  { %212 = vmatmul.mubr.f32.vlgmr.msra.gmra.mrb[0].mxu0 %v80_v26 }
  0x6f   :  { %217 = vmatprep.mubr.f32.mxu0 %v983_v0  ;;  %v111_v0 = vld [vmem:[#allocation5 + $0xe8] sm:$0xff] }
  0x70   :  { %v775_v1 = vpack.c.bf16 %v111_v0, %v108_v63 }
  0x72   :  { %218 = vmatmul.mubr.f32.gmra.mrb[2].mxu0 %v81_v50  ;;  %776 = vmatprep.subr.bf16.mxu1 %v775_v1 }
  0x73   :  { %778 = vmatpush3.bf16.msra.mxu1 %v775_v1  ;;  %v302_v1 = vld [vmem:[#allocation8 + $0x8] sm:$0xff] }
  0x74   :  { %780 = vmatprep.subr.bf16.mxu1 %v779_v4 }
  0x77   :  { %782 = vmatpush3.bf16.msra.mxu1 %v779_v4 }
  0x78   :  { %784 = vmatprep.subr.bf16.mxu1 %v783_v7 }
  0x7b   :  { %786 = vmatpush3.bf16.msra.mxu1 %v783_v7 }
  0x7c   :  { %788 = vmatprep.subr.bf16.mxu1 %v787_v10 }
  0x7f   :  { %790 = vmatpush3.bf16.msra.mxu1 %v787_v10 }
  0x82   :  { %725 = vmatmul.mubr.f32.vlgmr.msra.gmra.mrb[0].mxu1 %v81_v50 }
 0x141   :  { %v213_v16 = vpop.f32.mrb[0].mxu0 }
 0x142   :  { %v1110_v17 = vadd.f32 %v213_v16, %v135_v15  ;;  %v215_v19 = vpop.f32.mrb[1].mxu0 }
 0x143   :  { %v1123_v24 = vadd.f32 %v215_v19, %v139_v21 }
 0x144   :  { %376 = vrot.lane.b32.xlu0 %v1110_v17, %s984_s25  ;;  %338 = vrot.lane.b32.xlu1 %v1110_v17, %s985_s28  ;;  %v303_v26 = vsub.f32 0.0, %v1110_v17 }
 0x145   :  { %v219_v20 = vpop.f32.mrb[2].mxu0  ;;  %v442_v28 = vsub.f32 0.0, %v1123_v24 }
 0x146   :  { %v1118_v22 = vadd.f32 %v219_v20, %v135_v15  ;;  %v221_v23 = vpop.f32.mrb[3].mxu0  ;;  %v142_v15 = vsub.s32 2, %v1101_v12 }
 0x147   :  { %v1132_v25 = vadd.f32 %v221_v23, %v139_v21 }
 0x148   :  { %412 = vrot.lane.b32.xlu0 %v1110_v17, %s986_s2  ;;  %340 = vrot.lane.b32.xlu1 %v1118_v22, %s985_s28  ;;  %v304_v27 = vsub.f32 0.0, %v1118_v22  ;;  %v143_v18 = vrot.slane %v1107_v14, %v142_v15 }
 0x149   :  { %v443_v29 = vsub.f32 0.0, %v1132_v25 }
 0x14c   :  { %474 = vrot.lane.b32.xlu0 %v1123_v24, %s985_s28  ;;  %378 = vrot.lane.b32.xlu1 %v1118_v22, %s984_s25 }
 0x150   :  { %502 = vrot.lane.b32.xlu0 %v1123_v24, %s984_s25  ;;  %414 = vrot.lane.b32.xlu1 %v1118_v22, %s986_s2 }
 0x154   :  { %476 = vrot.lane.b32.xlu1 %v1132_v25, %s985_s28  ;;  %332 = vrot.lane.b32.xlu0 %v303_v26, %s984_s25 }
 0x155   :  { %v726_v19 = vpop.f32.mrb[0].mxu1 }
 0x156   :  { %v290_v21 = vpop.f32.mrb[1].mxu1 }
 0x158   :  { %504 = vrot.lane.b32.xlu1 %v1132_v25, %s984_s25  ;;  %370 = vrot.lane.b32.xlu0 %v303_v26, %s986_s2 }
 0x15c   :  { %372 = vrot.lane.b32.xlu1 %v304_v27, %s986_s2  ;;  %406 = vrot.lane.b32.xlu0 %v303_v26, %s987_s29 }
 0x160   :  { %408 = vrot.lane.b32.xlu1 %v304_v27, %s987_s29  ;;  %468 = vrot.lane.b32.xlu0 %v442_v28, %s984_s25 }
 0x164   :  { %470 = vrot.lane.b32.xlu1 %v443_v29, %s984_s25  ;;  %496 = vrot.lane.b32.xlu0 %v442_v28, %s986_s2 }
 0x168   :  { %498 = vrot.lane.b32.xlu1 %v443_v29, %s986_s2  ;;  %524 = vrot.lane.b32.xlu0 %v442_v28, %s987_s29 }
 0x16c   :  { %526 = vrot.lane.b32.xlu1 %v443_v29, %s987_s29  ;;  %334 = vrot.lane.b32.xlu0 %v304_v27, %s984_s25 }
 0x170   :  { %532 = vrot.lane.b32.xlu1 %v1132_v25, %s986_s2  ;;  %530 = vrot.lane.b32.xlu0 %v1123_v24, %s986_s2 }
 0x174   :  { %309 = vrot.lane.b32.xlu1 %v304_v27, %s985_s28  ;;  %307 = vrot.lane.b32.xlu0 %v303_v26, %s985_s28  ;;  %v296_v27 = vadd.f32 %v726_v19, %v143_v18 }
 0x178   :  { %317 = vrot.lane.b32.xlu1 %v1118_v22, %s987_s29  ;;  %315 = vrot.lane.b32.xlu0 %v1110_v17, %s987_s29 }
 0x17c   :  { %350 = vrot.lane.b32.xlu1 %v1152_v30, %s988_s30  ;;  %348 = vrot.lane.b32.xlu0 %v1154_v31, %s988_s30 }
 0x180   :  { %456 = vrot.lane.b32.xlu1 %v1132_v25, %s987_s29  ;;  %446 = vrot.lane.b32.xlu0 %v442_v28, %s985_s28  ;;  %v291_v28 = vadd.f32 %v290_v21, %v143_v18 }
 0x184   :  { %386 = vrot.lane.b32.xlu1 %v1152_v30, %s989_s8  ;;  %454 = vrot.lane.b32.xlu0 %v1123_v24, %s987_s29 }
 0x188   :  { %422 = vrot.lane.b32.xlu1 %v1152_v30, %s990_s9  ;;  %384 = vrot.lane.b32.xlu0 %v1154_v31, %s989_s8 }
 0x18c   :  { %448 = vrot.lane.b32.xlu1 %v443_v29, %s985_s28  ;;  %420 = vrot.lane.b32.xlu0 %v1154_v31, %s990_s9  ;;  %v325_v29 = vmul.f32 %v1152_v30, %v1118_v22 }
 0x1b6   :  { %v377_v32 = vpop.permute.xlu0 %376  ;;  %v339_v33 = vpop.permute.xlu1 %338 }
 0x1ba   :  { %v413_v34 = vpop.permute.xlu0 %412  ;;  %v341_v35 = vpop.permute.xlu1 %340 }
 0x1be   :  { %v475_v36 = vpop.permute.xlu0 %474  ;;  %v379_v37 = vpop.permute.xlu1 %378 }
 0x1c2   :  { %v503_v38 = vpop.permute.xlu0 %502  ;;  %v415_v39 = vpop.permute.xlu1 %414 }
 0x1c6   :  { %v477_v41 = vpop.permute.xlu1 %476  ;;  %v333_v42 = vpop.permute.xlu0 %332 }
 0x1c7   :  { %v344_v43 = vsel %vm321_vm0, %v333_v42, %v339_v33 }
 0x1c8   :  { %v356_v44 = vmul.f32 %v344_v43, %v1172_v40 }
 0x1ca   :  { %v505_v45 = vpop.permute.xlu1 %504  ;;  %360 = vrot.lane.b32.xlu0 %v356_v44, %s988_s30  ;;  %v371_v46 = vpop.permute.xlu0 %370 }
 0x1cb   :  { %v382_v47 = vsel %vm321_vm0, %v371_v46, %v377_v32 }
 0x1cc   :  { %v392_v48 = vmul.f32 %v382_v47, %v1172_v40 }
 0x1ce   :  { %v373_v49 = vpop.permute.xlu1 %372  ;;  %396 = vrot.lane.b32.xlu0 %v392_v48, %s989_s8  ;;  %v407_v50 = vpop.permute.xlu0 %406 }
 0x1cf   :  { %v418_v51 = vsel %vm321_vm0, %v407_v50, %v413_v34  ;;  %v383_v4 = vsel %vm321_vm0, %v373_v49, %v379_v37 }
 0x1d0   :  { %v428_v52 = vmul.f32 %v418_v51, %v1172_v40  ;;  %v393_v8 = vmul.f32 %v383_v4, %v302_v1 }
 0x1d2   :  { %v409_v53 = vpop.permute.xlu1 %408  ;;  %432 = vrot.lane.b32.xlu0 %v428_v52, %s990_s9  ;;  %v469_v54 = vpop.permute.xlu0 %468 }
 0x1d3   :  { %v480_v55 = vsel %vm321_vm0, %v469_v54, %v475_v36  ;;  %v419_v10 = vsel %vm321_vm0, %v409_v53, %v415_v39  ;;  %v463_v53 = vmul.f32 %v1152_v30, %v1132_v25 }
 0x1d4   :  { %v484_v56 = vmul.f32 %v480_v55, %v1172_v40  ;;  %v429_v16 = vmul.f32 %v419_v10, %v302_v1 }
 0x1d6   :  { %v471_v57 = vpop.permute.xlu1 %470  ;;  %488 = vrot.lane.b32.xlu0 %v484_v56, %s988_s30  ;;  %v497_v58 = vpop.permute.xlu0 %496 }
 0x1d7   :  { %v508_v59 = vsel %vm321_vm0, %v497_v58, %v503_v38  ;;  %v481_v20 = vsel %vm321_vm0, %v471_v57, %v477_v41 }
 0x1d8   :  { %v512_v60 = vmul.f32 %v508_v59, %v1172_v40  ;;  %v485_v33 = vmul.f32 %v481_v20, %v302_v1 }
 0x1da   :  { %v499_v61 = vpop.permute.xlu1 %498  ;;  %516 = vrot.lane.b32.xlu0 %v512_v60, %s989_s8  ;;  %v525_v62 = vpop.permute.xlu0 %524 }
 0x1db   :  { %v509_v36 = vsel %vm321_vm0, %v499_v61, %v505_v45 }
 0x1dc   :  { %v513_v41 = vmul.f32 %v509_v36, %v302_v1 }
 0x1de   :  { %v527_v63 = vpop.permute.xlu1 %526  ;;  %v335_v0 = vpop.permute.xlu0 %334 }
 0x1df   :  { %v345_v2 = vsel %vm321_vm0, %v335_v0, %v341_v35  ;;  %v672_v35 = vpack.c.bf16 %v296_v27, %v291_v28 }
 0x1e0   :  { %v357_v3 = vmul.f32 %v345_v2, %v302_v1 }
 0x1e1   :  { %673 = vst [vmem:[#allocation13] sm:$0xff] %v672_v35  }
 0x1e2   :  { %v533_v5 = vpop.permute.xlu1 %532  ;;  %362 = vrot.lane.b32.xlu1 %v357_v3, %s988_s30  ;;  %v531_v6 = vpop.permute.xlu0 %530 }
 0x1e3   :  { %v536_v7 = vsel %vm321_vm0, %v525_v62, %v531_v6  ;;  %v537_v42 = vsel %vm321_vm0, %v527_v63, %v533_v5  ;;  %v324_v63 = vmul.f32 %v1154_v31, %v1110_v17 }
 0x1e4   :  { %v540_v9 = vmul.f32 %v536_v7, %v1172_v40  ;;  %v541_v46 = vmul.f32 %v537_v42, %v302_v1 }
 0x1e6   :  { %v310_v11 = vpop.permute.xlu1 %309  ;;  %398 = vrot.lane.b32.xlu1 %v393_v8, %s989_s8  ;;  %544 = vrot.lane.b32.xlu0 %v540_v9, %s990_s9  ;;  %v308_v13 = vpop.permute.xlu0 %307 }
 0x1ea   :  { %v318_v23 = vpop.permute.xlu1 %317  ;;  %434 = vrot.lane.b32.xlu1 %v429_v16, %s990_s9  ;;  %v316_v26 = vpop.permute.xlu0 %315 }
 0x1eb   :  { %v323_v32 = vsel %vm321_vm0, %v310_v11, %v318_v23  ;;  %v322_v12 = vsel %vm321_vm0, %v308_v13, %v316_v26 }
 0x1ec   :  { %v327_v34 = vmul.f32 %v323_v32, %v302_v1  ;;  %v326_v14 = vmul.f32 %v322_v12, %v1172_v40 }
 0x1ee   :  { %v329_v37 = vadd.f32 %v327_v34, %v325_v29  ;;  %v1207_v38 = vpop.permute.xlu1 %350  ;;  %490 = vrot.lane.b32.xlu1 %v485_v33, %s988_s30  ;;  %v1210_v39 = vpop.permute.xlu0 %348  ;;  %v328_v6 = vadd.f32 %v326_v14, %v324_v63 }
 0x1ef   :  { %v354_v62 = vmul.f32 %v1210_v39, %v1110_v17  ;;  %v483_v14 = vmul.f32 %v1207_v38, %v1132_v25  ;;  %v482_v35 = vmul.f32 %v1210_v39, %v1123_v24 }
 0x1f0   :  { %v331_v19 = vmul.f32 0.17677669, %v329_v37 }
 0x1f2   :  { %v457_v43 = vpop.permute.xlu1 %456  ;;  %518 = vrot.lane.b32.xlu1 %v513_v41, %s989_s8  ;;  %v447_v44 = vpop.permute.xlu0 %446 }
 0x1f6   :  { %v387_v47 = vpop.permute.xlu1 %386  ;;  %546 = vrot.lane.b32.xlu1 %v541_v46, %s990_s9  ;;  %v455_v45 = vpop.permute.xlu0 %454 }
 0x1f7   :  { %v460_v48 = vsel %vm321_vm0, %v447_v44, %v455_v45  ;;  %v391_v0 = vmul.f32 %v387_v47, %v1118_v22  ;;  %v511_v36 = vmul.f32 %v387_v47, %v1132_v25 }
 0x1f8   :  { %v1217_v49 = vmul.f32 %v460_v48, %v1172_v40  ;;  %v355_v40 = vmul.f32 %v1207_v38, %v1118_v22 }
 0x1fa   :  { %v1219_v50 = vpop.permute.xlu1 %422  ;;  %v385_v56 = vpop.permute.xlu0 %384 }
 0x1fb   :  { %v390_v30 = vmul.f32 %v385_v56, %v1110_v17  ;;  %v427_v10 = vmul.f32 %v1219_v50, %v1118_v22  ;;  %v510_v37 = vmul.f32 %v385_v56, %v1123_v24 }
 0x1fe   :  { %v449_v51 = vpop.permute.xlu1 %448  ;;  %v421_v57 = vpop.permute.xlu0 %420 }
 0x1ff   :  { %v461_v52 = vsel %vm321_vm0, %v449_v51, %v457_v43  ;;  %v462_v43 = vmul.f32 %v1154_v31, %v1123_v24  ;;  %v538_v44 = vmul.f32 %v421_v57, %v1123_v24 }
 0x200   :  { %v465_v54 = vmul.f32 %v461_v52, %v302_v1  ;;  %v426_v1 = vmul.f32 %v421_v57, %v1110_v17  ;;  %v330_v17 = vmul.f32 0.17677669, %v328_v6 }
 0x202   :  { %v1224_v55 = vadd.f32 %v465_v54, %v463_v53 }
 0x23c   :  { %v361_v58 = vpop.permute.xlu0 %360 }
 0x23d   :  { %v366_v2 = vadd.f32 %v361_v58, %v354_v62 }
 0x23f   :  { %v368_v11 = vmul.f32 0.17677669, %v366_v2 }
 0x240   :  { %v397_v59 = vpop.permute.xlu0 %396 }
 0x241   :  { %v402_v4 = vadd.f32 %v397_v59, %v390_v30  ;;  %v553_v23 = vsel %vm552_vm1, %v330_v17, %v368_v11 }
 0x243   :  { %v404_v15 = vmul.f32 0.17677669, %v402_v4 }
 0x244   :  { %v433_v60 = vpop.permute.xlu0 %432 }
 0x245   :  { %v438_v7 = vadd.f32 %v433_v60, %v426_v1  ;;  %v556_v22 = vsel %vm555_vm2, %v553_v23, %v404_v15 }
 0x247   :  { %v440_v20 = vmul.f32 0.17677669, %v438_v7 }
 0x248   :  { %v489_v9 = vpop.permute.xlu0 %488 }
 0x249   :  { %v559_v12 = vsel %vm558_vm3, %v556_v22, %v440_v20  ;;  %v494_v46 = vadd.f32 %v489_v9, %v482_v35 }
 0x24c   :  { %v517_v28 = vpop.permute.xlu0 %516 }
 0x254   :  { %v363_v61 = vpop.permute.xlu1 %362 }
 0x255   :  { %v367_v3 = vadd.f32 %v363_v61, %v355_v40 }
 0x257   :  { %v369_v13 = vmul.f32 0.17677669, %v367_v3 }
 0x258   :  { %v399_v5 = vpop.permute.xlu1 %398  ;;  %v545_v41 = vpop.permute.xlu0 %544 }
 0x259   :  { %v403_v8 = vadd.f32 %v399_v5, %v391_v0  ;;  %v554_v26 = vsel %vm552_vm1, %v331_v19, %v369_v13 }
 0x25b   :  { %v405_v16 = vmul.f32 0.17677669, %v403_v8 }
 0x25c   :  { %v435_v18 = vpop.permute.xlu1 %434 }
 0x25d   :  { %v439_v21 = vadd.f32 %v435_v18, %v427_v10  ;;  %v557_v29 = vsel %vm555_vm2, %v554_v26, %v405_v16 }
 0x25f   :  { %v441_v27 = vmul.f32 0.17677669, %v439_v21 }
 0x260   :  { %v491_v32 = vpop.permute.xlu1 %490 }
 0x261   :  { %v560_v33 = vsel %vm558_vm3, %v557_v29, %v441_v27  ;;  %v495_v45 = vadd.f32 %v491_v32, %v483_v14 }
 0x262   :  { %v662_v34 = vpack.c.bf16 %v560_v33, %v559_v12 }
 0x264   :  { %663 = vst [vmem:[#allocation10] sm:$0xff] %v662_v34   ;;  %v519_v42 = vpop.permute.xlu1 %518 }
 0x265   :  { %910 = shalt.err (!%p907_p8)
}
 0x266   :  { %s911_s15 = scalar_lea.hbm %s1319_s5, 128 }
 0x267   :  { %p912_p9 = scmp.ne.s32.totalorder %s1319_s5, %s911_s15  ;;  %p915_p10 = scmp.lt.u32.totalorder %s911_s15, %s1319_s5 }
 0x269   :  { %p917_p11 = pnand %p915_p10, %p912_p9 }
 0x26b   :  { %920 = shalt.err (!%p917_p11)
}
 0x26c   :  { %s992_s19 = smov 4   ;;  %v522_v24 = vadd.f32 %v517_v28, %v510_v37  ;;  %v523_v31 = vadd.f32 %v519_v42, %v511_v36  ;;  %v466_v38 = vadd.f32 %v1217_v49, %v462_v43  ;;  %v539_v39 = vmul.f32 %v1219_v50, %v1132_v25  ;;  %v547_v48 = vpop.permute.xlu1 %546  ;;  %s993_s22 = smov [#allocation11]  }
 0x26d   :  { %608 = dma.vmem_to_hbm [thread:$0]  %s603_s11, 128, %s1319_s5, [#allocation4], %s989_s8, %s989_s8, %s992_s19   ;;  %v550_v47 = vadd.f32 %v545_v41, %v538_v44  ;;  %v572_v52 = vsel %vm552_vm1, %v1224_v55, %v495_v45 }
 0x26e   :  { %v571_v51 = vsel %vm552_vm1, %v466_v38, %v494_v46  ;;  %v551_v53 = vadd.f32 %v547_v48, %v539_v39  ;;  %s614_s23 = sshll.u32 %s993_s22, 4  ;;  %v574_v56 = vsel %vm555_vm2, %v572_v52, %v523_v31  ;;  %s994_s5 = smov [#allocation13]   ;;  %s615_s23 = int_to_ptr.vmem [resolvable:$true] %s614_s23 }
 0x26f   :  { %v573_v54 = vsel %vm555_vm2, %v571_v51, %v522_v24  ;;  %s626_s24 = sshll.u32 %s994_s5, 4  ;;  %s921_s26 = scalar_lea.vmem %s615_s23, 128  ;;  %s1277_s24 = int_to_ptr.vmem [resolvable:$true] %s626_s24 }
 0x270   :  { %v575_v49 = vsel %vm558_vm3, %v573_v54, %v550_v47  ;;  %v576_v25 = vsel %vm558_vm3, %v574_v56, %v551_v53  ;;  %p922_p12 = scmp.ne.s32.totalorder %s615_s23, %s921_s26  ;;  %p926_p13 = scmp.lt.s32.totalorder %s615_s23, %s615_s23 }
 0x271   :  { %v667_v50 = vpack.c.bf16 %v576_v25, %v575_v49  ;;  %p927_p0 = scmp.lt.s32.totalorder %s921_s26, %s921_s26 }
 0x273   :  { %668 = vst [vmem:[#allocation11] sm:$0xff] %v667_v50   ;;  %p928_p1 = por %p927_p0, %p926_p13 }
 0x275   :  { %p929_p2 = pnand %p928_p1, %p922_p12 }
 0x277   :  { %932 = shalt.err (!%p929_p2)
}
 0x278   :  { %s933_s4 = scalar_lea.hbm %s1320_s6, 128 }
 0x279   :  { %p934_p3 = scmp.ne.s32.totalorder %s1320_s6, %s933_s4  ;;  %p937_p4 = scmp.lt.u32.totalorder %s933_s4, %s1320_s6 }
 0x27b   :  { %p939_p5 = pnand %p937_p4, %p934_p3 }
 0x27d   :  { %942 = shalt.err (!%p939_p5)
}
 0x27e   :  { %620 = dma.vmem_to_hbm [thread:$0]  %s615_s23, 128, %s1320_s6, [#allocation12], %s989_s8, %s989_s8, %s992_s19  }
 0x27f   :  { %s943_s9 = scalar_lea.vmem %s1277_s24, 128  ;;  %p948_p7 = scmp.lt.s32.totalorder %s1277_s24, %s1277_s24 }
 0x280   :  { %p944_p6 = scmp.ne.s32.totalorder %s1277_s24, %s943_s9  ;;  %p949_p8 = scmp.lt.s32.totalorder %s943_s9, %s943_s9 }
 0x282   :  { %p950_p9 = por %p949_p8, %p948_p7 }
 0x284   :  { %p951_p10 = pnand %p950_p9, %p944_p6 }
 0x286   :  { %954 = shalt.err (!%p951_p10)
}
 0x287   :  { %s955_s12 = scalar_lea.hbm %s1321_s7, 128 }
 0x288   :  { %p956_p11 = scmp.ne.s32.totalorder %s1321_s7, %s955_s12  ;;  %p959_p12 = scmp.lt.u32.totalorder %s955_s12, %s1321_s7 }
 0x28a   :  { %p961_p13 = pnand %p959_p12, %p956_p11 }
 0x28c   :  { %964 = shalt.err (!%p961_p13)
}
 0x28d   :  { %632 = dma.vmem_to_hbm [thread:$0]  %s1277_s24, 128, %s1321_s7, [#allocation12], %s989_s8, %s989_s8, %s992_s19  }
 0x28e   :  { %971 = dma.done.wait [#allocation4], 128  }
 0x28f   :  { %972 = vsyncadd [#allocation4], 4294967168 }
 0x290   :  { %973 = dma.done.wait [#allocation12], 256  }
 0x291   :  { %974 = vsyncadd [#allocation12], 4294967040 }
 0x292   :  { %642 = vsyncpa [#allocation3], 1 }
 0x293   :  { %643 = vsyncpa [#allocation6], 1 }
 0x294   :  { %644 = vsyncpa [#allocation9], 1 }
 0x295   :  { %645 = vsyncpa [#allocation4], 1 }
 0x296   :  { %646 = vsyncpa [#allocation12], 1 }

</bundles_post_ra>
